<compile_context>
chip_gen: v7x
topology: tpu7x:2x2x1
jax: 0.10.0
libtpu: 0.0.40
codegen_flags: <defaults>
</compile_context>

<pallas_src>
import functools

import jax
import jax.numpy as jnp
from jax.experimental import pallas as pl
from jax.experimental.pallas import tpu as pltpu


def _round_up(x, m):
    return (x + m - 1) // m * m


# ---------------------------------------------------------------------------
# Kernel
# ---------------------------------------------------------------------------
def _encoder_kernel(x_ref,
                    w1_ref, b1_ref,
                    w2_ref, b2_ref,
                    w3_ref, b3_ref,
                    wh_ref, bh_ref,
                    out_ref):
    # In-kernel f32 -> bf16 cast of the x tile (x arrives as f32 straight from
    # HBM; the cast is VPU work hidden under the MXU).
    x = x_ref[...].astype(jnp.bfloat16)

    # encod: three (Linear -> ReLU) blocks, bf16 operands, f32 accumulation.
    h = jnp.dot(x, w1_ref[...], preferred_element_type=jnp.float32) + b1_ref[...]
    h = jnp.maximum(h, 0.0).astype(jnp.bfloat16)

    h = jnp.dot(h, w2_ref[...], preferred_element_type=jnp.float32) + b2_ref[...]
    h = jnp.maximum(h, 0.0).astype(jnp.bfloat16)

    h = jnp.dot(h, w3_ref[...], preferred_element_type=jnp.float32) + b3_ref[...]
    h = jnp.maximum(h, 0.0).astype(jnp.bfloat16)

    # Fused (mu | log_sigma2 | zero-pad) head: lane-dense (>=128 cols),
    # unmasked vst; stored in bf16 to halve the writeback.
    out_ref[...] = (jnp.dot(h, wh_ref[...], preferred_element_type=jnp.float32)
                    + bh_ref[...]).astype(out_ref.dtype)


# ---------------------------------------------------------------------------
# One-time parameter prep (hoisted out of the per-call forward)
# ---------------------------------------------------------------------------
def prepare_params(params):
    """Fuse + zero-pad the mu/log_sigma2 heads and cast weights to bf16.

    Run ONCE after parameter creation / update, not per forward call.
    Returns (prepped_dict, zd_dim).
    """
    (w1, b1), (w2, b2), (w3, b3), (wmu, bmu), (wls, bls) = params
    zd_dim = wmu.shape[1]
    F3 = w3.shape[1]

    head_w = 2 * zd_dim
    head_pad = max(128, _round_up(head_w, 128))
    w_head = jnp.zeros((F3, head_pad), jnp.float32)
    w_head = w_head.at[:, :zd_dim].set(wmu).at[:, zd_dim:head_w].set(wls)
    b_head = jnp.zeros((1, head_pad), jnp.float32)
    b_head = b_head.at[:, :zd_dim].set(bmu).at[:, zd_dim:head_w].set(bls)

    prepped = {
        "w1": w1.astype(jnp.bfloat16), "b1": b1,
        "w2": w2.astype(jnp.bfloat16), "b2": b2,
        "w3": w3.astype(jnp.bfloat16), "b3": b3,
        "wh": w_head.astype(jnp.bfloat16), "bh": b_head,
    }
    return prepped, zd_dim


# ---------------------------------------------------------------------------
# Batch tiling plan (trace-time Python, static shapes)
# ---------------------------------------------------------------------------
def _plan_batch(B, tile_cap):
    """Return (TILE_B, B_pad).

    Preferences: (1) no jnp.pad copy of x, (2) >=2 grid steps when B > 8 so
    v7x's two TensorCores both get work, (3) tiles capped by the VMEM budget.
    """
    if B % 8 != 0:
        if B <= tile_cap:
            return B, B                      # single full-extent block, no pad
        B_pad = _round_up(B, 8)              # rare: big ragged batch, pad <8 rows
    else:
        B_pad = B
    if B_pad <= 8:
        return B_pad, B_pad
    tile = min(tile_cap, _round_up(B_pad // 2, 8))
    while B_pad % tile:                      # make the tile divide B_pad exactly
        tile -= 8
    return tile, B_pad


# ---------------------------------------------------------------------------
# Forward
# ---------------------------------------------------------------------------
@functools.partial(jax.jit, static_argnames="zd_dim")
def linear_encoder_forward(x, prepped, *, zd_dim):
    """x: (B, 3, H, W) float32 -> (mu, log_sigma2), each (B, zd_dim) float32."""
    B = x.shape[0]
    assert x.shape[1] == 3
    D_in = 3 * x.shape[2] * x.shape[3]
    x_flat = x.reshape(B, D_in)              # same layout as torch.reshape (NCHW)

    w1, b1 = prepped["w1"], prepped["b1"]
    w2, b2 = prepped["w2"], prepped["b2"]
    w3, b3 = prepped["w3"], prepped["b3"]
    wh, bh = prepped["wh"], prepped["bh"]
    F1, F2, F3 = w1.shape[1], w2.shape[1], w3.shape[1]
    head_pad = wh.shape[1]

    # Cap the batch tile so double-buffered f32 x tiles stay within ~12 MiB.
    x_tile_budget = 12 * 1024 * 1024
    tile_cap = min(1024, max(8, (x_tile_budget // (8 * D_in)) // 8 * 8))
    TILE_B, B_pad = _plan_batch(B, tile_cap)
    if B_pad != B:
        x_flat = jnp.pad(x_flat, ((0, B_pad - B), (0, 0)))

    grid = (B_pad // TILE_B,)
    const = lambda i: (0, 0)                 # weights/biases VMEM-resident

    in_specs = [
        pl.BlockSpec((TILE_B, D_in), lambda i: (i, 0)),   # x tile (f32)
        pl.BlockSpec((D_in, F1), const), pl.BlockSpec((1, F1), const),
        pl.BlockSpec((F1, F2), const),   pl.BlockSpec((1, F2), const),
        pl.BlockSpec((F2, F3), const),   pl.BlockSpec((1, F3), const),
        pl.BlockSpec((F3, head_pad), const), pl.BlockSpec((1, head_pad), const),
    ]
    out_spec = pl.BlockSpec((TILE_B, head_pad), lambda i: (i, 0))

    flops = 2 * B_pad * (D_in * F1 + F1 * F2 + F2 * F3 + F3 * head_pad)
    bytes_accessed = (
        B_pad * D_in * 4                                   # x read (f32)
        + (w1.size + w2.size + w3.size + wh.size) * 2      # bf16 weights
        + (b1.size + b2.size + b3.size + bh.size) * 4      # f32 biases
        + B_pad * head_pad * 2                             # bf16 output
    )

    out = pl.pallas_call(
        _encoder_kernel,
        out_shape=jax.ShapeDtypeStruct((B_pad, head_pad), jnp.bfloat16),
        grid=grid,
        in_specs=in_specs,
        out_specs=out_spec,
        compiler_params=pltpu.CompilerParams(
            dimension_semantics=("parallel",),
            vmem_limit_bytes=32 * 1024 * 1024),
        cost_estimate=pl.CostEstimate(
            flops=flops, transcendentals=0, bytes_accessed=bytes_accessed),
    )(x_flat, w1, b1, w2, b2, w3, b3, wh, bh)

    mu = out[:B, :zd_dim].astype(jnp.float32)
    log_sigma2 = out[:B, zd_dim:2 * zd_dim].astype(jnp.float32)
    return mu, log_sigma2


# ---------------------------------------------------------------------------
# Parameter init / reference
# ---------------------------------------------------------------------------
def init_params(key, input_dim, features_dim, zd_dim):
    """Deterministic init. Weights stored as (in, out); biases as (1, out)."""
    dims = [input_dim, features_dim[0], features_dim[1], features_dim[2]]
    params = []
    keys = jax.random.split(key, 5)
    # three encoder blocks
    for i in range(3):
        fan_in, fan_out = dims[i], dims[i + 1]
        bound = 1.0 / jnp.sqrt(fan_in)
        w = jax.random.uniform(keys[i], (fan_in, fan_out), jnp.float32, -bound, bound)
        b = jax.random.uniform(jax.random.fold_in(keys[i], 1), (1, fan_out),
                               jnp.float32, -bound, bound)
        params.append((w, b))
    # mu / log_sigma2 heads
    for k in keys[3:]:
        fan_in, fan_out = dims[3], zd_dim
        bound = 1.0 / jnp.sqrt(fan_in)
        w = jax.random.uniform(k, (fan_in, fan_out), jnp.float32, -bound, bound)
        b = jax.random.uniform(jax.random.fold_in(k, 1), (1, fan_out),
                               jnp.float32, -bound, bound)
        params.append((w, b))
    return tuple(params)


def _reference_forward(x, params):
    """Pure-JAX f32 reference of the PyTorch forward."""
    B = x.shape[0]
    h = x.reshape(B, -1)
    (w1, b1), (w2, b2), (w3, b3), (wmu, bmu), (wls, bls) = params
    h = jnp.maximum(h @ w1 + b1, 0.0)
    h = jnp.maximum(h @ w2 + b2, 0.0)
    h = jnp.maximum(h @ w3 + b3, 0.0)
    return h @ wmu + bmu, h @ wls + bls


if __name__ == "__main__":
    # Small shapes consistent with the module: batch=2, input (3, 16, 16).
    B, C, H, W = 2, 3, 16, 16
    features_dim = [128, 128, 256]
    zd_dim = 16
    input_dim = C * H * W

    key = jax.random.PRNGKey(0)
    kx, kp = jax.random.split(key)
    x = jax.random.normal(kx, (B, C, H, W), jnp.float32)
    params = init_params(kp, input_dim, features_dim, zd_dim)

    # One-time parameter prep (fused/padded head + bf16 weights), then forward.
    prepped, zd = prepare_params(params)
    prepped = jax.block_until_ready(prepped)

    mu, log_sigma2 = linear_encoder_forward(x, prepped, zd_dim=zd)
    mu, log_sigma2 = jax.block_until_ready((mu, log_sigma2))

    mu_ref, ls_ref = _reference_forward(x, params)
    assert mu.shape == (B, zd_dim) and log_sigma2.shape == (B, zd_dim)
    # bf16 operands / bf16 head store -> looser tolerance vs the f32 reference.
    assert jnp.allclose(mu, mu_ref, atol=5e-2, rtol=5e-2)
    assert jnp.allclose(log_sigma2, ls_ref, atol=5e-2, rtol=5e-2)

    print("KERNEL_OK")
</pallas_src>

<mosaic_0001>
module attributes {stable_mosaic.version = 11 : i64} {
  func.func @_encoder_kernel(%arg0: i32, %arg1: memref<2x768xf32, #tpu.memory_space<vmem>>, %arg2: memref<768x128xbf16, #tpu.memory_space<vmem>>, %arg3: memref<1x128xf32, #tpu.memory_space<vmem>>, %arg4: memref<128x128xbf16, #tpu.memory_space<vmem>>, %arg5: memref<1x128xf32, #tpu.memory_space<vmem>>, %arg6: memref<128x256xbf16, #tpu.memory_space<vmem>>, %arg7: memref<1x256xf32, #tpu.memory_space<vmem>>, %arg8: memref<256x128xbf16, #tpu.memory_space<vmem>>, %arg9: memref<1x128xf32, #tpu.memory_space<vmem>>, %arg10: memref<2x128xbf16, #tpu.memory_space<vmem>>) attributes {dimension_semantics = [#tpu.dimension_semantics<parallel>], iteration_bounds = array<i64: 1>, scalar_prefetch = 0 : i64, scratch_operands = 0 : i64, tpu.core_type = #tpu.core_type<tc>, window_params = [{transform_indices = @transform_0, window_bounds = array<i64: 2, 768>}, {pipeline_mode = #tpu.pipeline_mode<synchronous>, transform_indices = @transform_1, window_bounds = array<i64: 768, 128>}, {pipeline_mode = #tpu.pipeline_mode<synchronous>, transform_indices = @transform_2, window_bounds = array<i64: 1, 128>}, {pipeline_mode = #tpu.pipeline_mode<synchronous>, transform_indices = @transform_3, window_bounds = array<i64: 128, 128>}, {pipeline_mode = #tpu.pipeline_mode<synchronous>, transform_indices = @transform_4, window_bounds = array<i64: 1, 128>}, {pipeline_mode = #tpu.pipeline_mode<synchronous>, transform_indices = @transform_5, window_bounds = array<i64: 128, 256>}, {pipeline_mode = #tpu.pipeline_mode<synchronous>, transform_indices = @transform_6, window_bounds = array<i64: 1, 256>}, {pipeline_mode = #tpu.pipeline_mode<synchronous>, transform_indices = @transform_7, window_bounds = array<i64: 256, 128>}, {pipeline_mode = #tpu.pipeline_mode<synchronous>, transform_indices = @transform_8, window_bounds = array<i64: 1, 128>}, {transform_indices = @transform_9, window_bounds = array<i64: 2, 128>}]} {
    %c0 = arith.constant 0 : index
    %c0_0 = arith.constant 0 : index
    %0 = vector.load %arg1[%c0, %c0_0] : memref<2x768xf32, #tpu.memory_space<vmem>>, vector<2x768xf32>
    %1 = arith.truncf %0 : vector<2x768xf32> to vector<2x768xbf16>
    %c0_1 = arith.constant 0 : index
    %c0_2 = arith.constant 0 : index
    %2 = vector.load %arg2[%c0_1, %c0_2] : memref<768x128xbf16, #tpu.memory_space<vmem>>, vector<768x128xbf16>
    %cst = arith.constant dense<0.000000e+00> : vector<2x128xf32>
    %3 = tpu.matmul %1, %2, %cst {dimension_numbers = #tpu.dot_dimension_numbers<[1], [0], [0], [1], [0, 0, 1, 1], [], []>} : vector<2x768xbf16>, vector<768x128xbf16>, vector<2x128xf32> -> vector<2x128xf32>
    %c0_3 = arith.constant 0 : index
    %c0_4 = arith.constant 0 : index
    %4 = vector.load %arg3[%c0_3, %c0_4] : memref<1x128xf32, #tpu.memory_space<vmem>>, vector<1x128xf32>
    %5 = vector.broadcast %4 : vector<1x128xf32> to vector<2x128xf32>
    %6 = arith.addf %3, %5 : vector<2x128xf32>
    %cst_5 = arith.constant 0.000000e+00 : f32
    %7 = vector.broadcast %cst_5 : f32 to vector<2x128xf32>
    %8 = arith.maximumf %6, %7 : vector<2x128xf32>
    %9 = arith.truncf %8 : vector<2x128xf32> to vector<2x128xbf16>
    %c0_6 = arith.constant 0 : index
    %c0_7 = arith.constant 0 : index
    %10 = vector.load %arg4[%c0_6, %c0_7] : memref<128x128xbf16, #tpu.memory_space<vmem>>, vector<128x128xbf16>
    %cst_8 = arith.constant dense<0.000000e+00> : vector<2x128xf32>
    %11 = tpu.matmul %9, %10, %cst_8 {dimension_numbers = #tpu.dot_dimension_numbers<[1], [0], [0], [1], [0, 0, 1, 1], [], []>} : vector<2x128xbf16>, vector<128x128xbf16>, vector<2x128xf32> -> vector<2x128xf32>
    %c0_9 = arith.constant 0 : index
    %c0_10 = arith.constant 0 : index
    %12 = vector.load %arg5[%c0_9, %c0_10] : memref<1x128xf32, #tpu.memory_space<vmem>>, vector<1x128xf32>
    %13 = vector.broadcast %12 : vector<1x128xf32> to vector<2x128xf32>
    %14 = arith.addf %11, %13 : vector<2x128xf32>
    %cst_11 = arith.constant 0.000000e+00 : f32
    %15 = vector.broadcast %cst_11 : f32 to vector<2x128xf32>
    %16 = arith.maximumf %14, %15 : vector<2x128xf32>
    %17 = arith.truncf %16 : vector<2x128xf32> to vector<2x128xbf16>
    %c0_12 = arith.constant 0 : index
    %c0_13 = arith.constant 0 : index
    %18 = vector.load %arg6[%c0_12, %c0_13] : memref<128x256xbf16, #tpu.memory_space<vmem>>, vector<128x256xbf16>
    %cst_14 = arith.constant dense<0.000000e+00> : vector<2x256xf32>
    %19 = tpu.matmul %17, %18, %cst_14 {dimension_numbers = #tpu.dot_dimension_numbers<[1], [0], [0], [1], [0, 0, 1, 1], [], []>} : vector<2x128xbf16>, vector<128x256xbf16>, vector<2x256xf32> -> vector<2x256xf32>
    %c0_15 = arith.constant 0 : index
    %c0_16 = arith.constant 0 : index
    %20 = vector.load %arg7[%c0_15, %c0_16] : memref<1x256xf32, #tpu.memory_space<vmem>>, vector<1x256xf32>
    %21 = vector.broadcast %20 : vector<1x256xf32> to vector<2x256xf32>
    %22 = arith.addf %19, %21 : vector<2x256xf32>
    %cst_17 = arith.constant 0.000000e+00 : f32
    %23 = vector.broadcast %cst_17 : f32 to vector<2x256xf32>
    %24 = arith.maximumf %22, %23 : vector<2x256xf32>
    %25 = arith.truncf %24 : vector<2x256xf32> to vector<2x256xbf16>
    %c0_18 = arith.constant 0 : index
    %c0_19 = arith.constant 0 : index
    %26 = vector.load %arg8[%c0_18, %c0_19] : memref<256x128xbf16, #tpu.memory_space<vmem>>, vector<256x128xbf16>
    %cst_20 = arith.constant dense<0.000000e+00> : vector<2x128xf32>
    %27 = tpu.matmul %25, %26, %cst_20 {dimension_numbers = #tpu.dot_dimension_numbers<[1], [0], [0], [1], [0, 0, 1, 1], [], []>} : vector<2x256xbf16>, vector<256x128xbf16>, vector<2x128xf32> -> vector<2x128xf32>
    %c0_21 = arith.constant 0 : index
    %c0_22 = arith.constant 0 : index
    %28 = vector.load %arg9[%c0_21, %c0_22] : memref<1x128xf32, #tpu.memory_space<vmem>>, vector<1x128xf32>
    %29 = vector.broadcast %28 : vector<1x128xf32> to vector<2x128xf32>
    %30 = arith.addf %27, %29 : vector<2x128xf32>
    %31 = arith.truncf %30 : vector<2x128xf32> to vector<2x128xbf16>
    %c0_23 = arith.constant 0 : index
    %c0_24 = arith.constant 0 : index
    %32 = vector.load %arg10[%c0_23, %c0_24] : memref<2x128xbf16, #tpu.memory_space<vmem>>, vector<2x128xbf16>
    tpu.vector_store %arg10[%c0_23, %c0_24], %31 {strides = array<i32>} : memref<2x128xbf16, #tpu.memory_space<vmem>>, vector<2x128xbf16>,
    return
  }
  func.func @transform_0(%arg0: i32) -> (i32, i32) {
    %c0_i32 = arith.constant 0 : i32
    %c0_i32_0 = arith.constant 0 : i32
    return %arg0, %c0_i32 : i32, i32
  }
  func.func @transform_1(%arg0: i32) -> (i32, i32) {
    %c0_i32 = arith.constant 0 : i32
    %c0_i32_0 = arith.constant 0 : i32
    %c0_i32_1 = arith.constant 0 : i32
    return %c0_i32, %c0_i32_0 : i32, i32
  }
  func.func @transform_2(%arg0: i32) -> (i32, i32) {
    %c0_i32 = arith.constant 0 : i32
    %c0_i32_0 = arith.constant 0 : i32
    %c0_i32_1 = arith.constant 0 : i32
    return %c0_i32, %c0_i32_0 : i32, i32
  }
  func.func @transform_3(%arg0: i32) -> (i32, i32) {
    %c0_i32 = arith.constant 0 : i32
    %c0_i32_0 = arith.constant 0 : i32
    %c0_i32_1 = arith.constant 0 : i32
    return %c0_i32, %c0_i32_0 : i32, i32
  }
  func.func @transform_4(%arg0: i32) -> (i32, i32) {
    %c0_i32 = arith.constant 0 : i32
    %c0_i32_0 = arith.constant 0 : i32
    %c0_i32_1 = arith.constant 0 : i32
    return %c0_i32, %c0_i32_0 : i32, i32
  }
  func.func @transform_5(%arg0: i32) -> (i32, i32) {
    %c0_i32 = arith.constant 0 : i32
    %c0_i32_0 = arith.constant 0 : i32
    %c0_i32_1 = arith.constant 0 : i32
    return %c0_i32, %c0_i32_0 : i32, i32
  }
  func.func @transform_6(%arg0: i32) -> (i32, i32) {
    %c0_i32 = arith.constant 0 : i32
    %c0_i32_0 = arith.constant 0 : i32
    %c0_i32_1 = arith.constant 0 : i32
    return %c0_i32, %c0_i32_0 : i32, i32
  }
  func.func @transform_7(%arg0: i32) -> (i32, i32) {
    %c0_i32 = arith.constant 0 : i32
    %c0_i32_0 = arith.constant 0 : i32
    %c0_i32_1 = arith.constant 0 : i32
    return %c0_i32, %c0_i32_0 : i32, i32
  }
  func.func @transform_8(%arg0: i32) -> (i32, i32) {
    %c0_i32 = arith.constant 0 : i32
    %c0_i32_0 = arith.constant 0 : i32
    %c0_i32_1 = arith.constant 0 : i32
    return %c0_i32, %c0_i32_0 : i32, i32
  }
  func.func @transform_9(%arg0: i32) -> (i32, i32) {
    %c0_i32 = arith.constant 0 : i32
    %c0_i32_0 = arith.constant 0 : i32
    return %arg0, %c0_i32 : i32, i32
  }
}

</mosaic_0001>

<bundles_post_ra>
// kernel: linear_encoder_forward.1
= control target key start
LH: loop header
LB: loop body
LE: loop exit
PB: predicated region body
PF: predicated region fallthrough
CT: control target
= control target key end

     0   :  { %14 = vsyncpa [#allocation3], 0  ;;  %s1647_s0 = inlined_call_operand.vmem [shape: f32[2,768], index: 0, kind: input, shape index: {}]   ;;  %s1648_s1 = inlined_call_operand.hbm [shape: bf16[768,128], index: 1, kind: input, shape index: {}]   ;;  %s1649_s2 = inlined_call_operand.vmem [shape: f32[1,128], index: 2, kind: input, shape index: {}]   ;;  %s1650_s3 = inlined_call_operand.hbm [shape: bf16[128,128], index: 3, kind: input, shape index: {}]   ;;  %s1651_s4 = inlined_call_operand.vmem [shape: f32[1,128], index: 4, kind: input, shape index: {}]   ;;  %s1652_s5 = inlined_call_operand.vmem [shape: bf16[128,256], index: 5, kind: input, shape index: {}]   ;;  %s1653_s6 = inlined_call_operand.vmem [shape: f32[1,256], index: 6, kind: input, shape index: {}]   ;;  %s1654_s7 = inlined_call_operand.hbm [shape: bf16[256,128], index: 7, kind: input, shape index: {}]   ;;  %s1655_s8 = inlined_call_operand.vmem [shape: f32[1,128], index: 8, kind: input, shape index: {}]   ;;  %s1656_s9 = inlined_call_operand.vmem [shape: bf16[2,128], index: 9, kind: output, shape index: {}]  }
   0x1   :  { %15 = vsyncpa [#allocation5], 0  ;;  %s1462_s30 = smov [#allocation4]   ;;  %s1463_s11 = smov [#allocation2]  }
   0x2   :  { %s37_s10 = sshll.u32 %s1462_s30, 4  ;;  %s23_s12 = sshll.u32 %s1463_s11, 4  ;;  %s38_s10 = int_to_ptr.vmem [resolvable:$true] %s37_s10  ;;  %s1521_s12 = int_to_ptr.vmem [resolvable:$true] %s23_s12 }
   0x3   :  { %s1392_s15 = scalar_lea.hbm %s1650_s3, 1024 }
   0x4   :  { %p1393_p0 = scmp.ne.s32.totalorder %s1650_s3, %s1392_s15  ;;  %p1396_p1 = scmp.lt.u32.totalorder %s1392_s15, %s1650_s3 }
   0x6   :  { %p1398_p2 = pnand %p1396_p1, %p1393_p0 }
   0x8   :  { %1401 = shalt.err (!%p1398_p2)
}
   0x9   :  { %s1402_s20 = scalar_lea.vmem %s38_s10, 1024  ;;  %p1407_p4 = scmp.lt.s32.totalorder %s38_s10, %s38_s10 }
   0xa   :  { %p1403_p3 = scmp.ne.s32.totalorder %s38_s10, %s1402_s20  ;;  %p1408_p5 = scmp.lt.s32.totalorder %s1402_s20, %s1402_s20 }
   0xc   :  { %p1409_p6 = por %p1408_p5, %p1407_p4 }
   0xe   :  { %p1410_p7 = pnand %p1409_p6, %p1403_p3 }
  0x10   :  { %1413 = shalt.err (!%p1410_p7)
}
  0x11   :  { %s1464_s21 = smov 64   ;;  %s1465_s22 = smov 4  }
  0x12   :  { %43 = dma.hbm_to_vmem [thread:$0]  %s1650_s3, 1024, %s38_s10, [#allocation5], %s1464_s21, %s1464_s21, %s1465_s22  }
  0x13   :  { %s1414_s27 = scalar_lea.hbm %s1648_s1, 6144 }
  0x14   :  { %p1415_p8 = scmp.ne.s32.totalorder %s1648_s1, %s1414_s27  ;;  %p1418_p9 = scmp.lt.u32.totalorder %s1414_s27, %s1648_s1 }
  0x16   :  { %p1420_p10 = pnand %p1418_p9, %p1415_p8 }
  0x18   :  { %1423 = shalt.err (!%p1420_p10)
}
  0x19   :  { %s1424_s13 = scalar_lea.vmem %s1521_s12, 6144  ;;  %p1429_p12 = scmp.lt.s32.totalorder %s1521_s12, %s1521_s12 }
  0x1a   :  { %p1425_p11 = scmp.ne.s32.totalorder %s1521_s12, %s1424_s13  ;;  %p1430_p13 = scmp.lt.s32.totalorder %s1424_s13, %s1424_s13 }
  0x1c   :  { %p1431_p0 = por %p1430_p13, %p1429_p12 }
  0x1e   :  { %p1432_p1 = pnand %p1431_p0, %p1425_p11 }
  0x20   :  { %1435 = shalt.err (!%p1432_p1)
}
  0x21   :  { %29 = dma.hbm_to_vmem [thread:$0]  %s1648_s1, 6144, %s1521_s12, [#allocation3], %s1464_s21, %s1464_s21, %s1465_s22  }
  0x22   :  { %s1466_s14 = smov [#allocation6]   ;;  %s1436_s18 = scalar_lea.hbm %s1654_s7, 2048 }
  0x23   :  { %s55_s15 = sshll.u32 %s1466_s14, 4  ;;  %p1437_p2 = scmp.ne.s32.totalorder %s1654_s7, %s1436_s18  ;;  %s56_s15 = int_to_ptr.vmem [resolvable:$true] %s55_s15 }
  0x24   :  { %p1440_p3 = scmp.lt.u32.totalorder %s1436_s18, %s1654_s7 }
  0x26   :  { %p1442_p4 = pnand %p1440_p3, %p1437_p2 }
  0x28   :  { %1445 = shalt.err (!%p1442_p4)
}
  0x29   :  { %s1446_s25 = scalar_lea.vmem %s56_s15, 2048  ;;  %p1451_p6 = scmp.lt.s32.totalorder %s56_s15, %s56_s15 }
  0x2a   :  { %p1447_p5 = scmp.ne.s32.totalorder %s56_s15, %s1446_s25  ;;  %p1452_p7 = scmp.lt.s32.totalorder %s1446_s25, %s1446_s25 }
  0x2c   :  { %p1453_p8 = por %p1452_p7, %p1451_p6 }
  0x2e   :  { %p1454_p9 = pnand %p1453_p8, %p1447_p5 }
  0x30   :  { %1457 = shalt.err (!%p1454_p9)
}
  0x31   :  { %61 = dma.hbm_to_vmem [thread:$0]  %s1654_s7, 2048, %s56_s15, [#allocation5], %s1464_s21, %s1464_s21, %s1465_s22  }
  0x32   :  { %1458 = dma.done.wait [#allocation3], 6144  }
  0x33   :  { %1459 = vsyncadd [#allocation3], 4294961152 }
  0x34   :  { %1460 = dma.done.wait [#allocation5], 3072  }
  0x35   :  { %1461 = vsyncadd [#allocation5], 4294964224  ;;  %v1295_v0 = vld [vmem:[#allocation2 + $0x40] sm:$0xff]   ;;  %v1299_v4 = vld [vmem:[#allocation2 + $0x48] sm:$0xff]   ;;  %v1467_v21 = vmov 1983009808   ;;  %v82_v23 = vlaneseq }
  0x36   :  { %v1296_v1 = vld [vmem:[#allocation2] sm:$0xff]   ;;  %1169 = vmatprep.subr.bf16.mxu0 %v1295_v0  ;;  %v1300_v5 = vld [vmem:[#allocation2 + $0x8] sm:$0xff]   ;;  %v1303_v8 = vld [vmem:[#allocation2 + $0x50] sm:$0xff]   ;;  %v80_v22 = vunpack.c.l.s4 %v1467_v21  ;;  %vm1469_vm0 = vmmov 0  }
  0x37   :  { %v1297_v2 = vld [vmem:[#allocation2 + $0xc0] sm:$0xff]   ;;  %1170 = vmatpush3.bf16.msra.mxu0 %v1296_v1  ;;  %v1301_v6 = vld [vmem:[#allocation2 + $0xc8] sm:$0xff]   ;;  %v1304_v9 = vld [vmem:[#allocation2 + $0x10] sm:$0xff]   ;;  %v1573_v29 = vshrl.u32 %v82_v23, 7 }
  0x38   :  { %v1298_v3 = vld [vmem:[#allocation2 + $0x80] sm:$0xff]   ;;  %1191 = vmatprep.subr.bf16.mxu1 %v1297_v2  ;;  %1171 = vmatprep.subr.bf16.mxu0 %v1299_v4  ;;  %v1302_v7 = vld [vmem:[#allocation2 + $0x88] sm:$0xff]   ;;  %v1305_v10 = vld [vmem:[#allocation2 + $0xd0] sm:$0xff]   ;;  %v81_v28 = vunpack.c.0.s8 %v80_v22 }
  0x39   :  { %1192 = vmatpush3.bf16.msra.mxu1 %v1298_v3  ;;  %v1306_v11 = vld [vmem:[#allocation2 + $0x90] sm:$0xff]   ;;  %v1307_v12 = vld [vmem:[#allocation2 + $0x58] sm:$0xff]   ;;  %v1311_v16 = vld [vmem:[#allocation2 + $0x60] sm:$0xff]  }
  0x3a   :  { %1193 = vmatprep.subr.bf16.mxu1 %v1301_v6  ;;  %v1308_v13 = vld [vmem:[#allocation2 + $0x18] sm:$0xff]   ;;  %v1312_v17 = vld [vmem:[#allocation2 + $0x20] sm:$0xff]   ;;  %v1315_v20 = vld [vmem:[#allocation2 + $0x68] sm:$0xff]   ;;  %v84_v34 = vsub.s32 %v81_v28, %v1573_v29 }
  0x3b   :  { %1172 = vmatpush3.bf16.msra.mxu0 %v1300_v5  ;;  %v1309_v14 = vld [vmem:[#allocation2 + $0xd8] sm:$0xff]   ;;  %v1313_v18 = vld [vmem:[#allocation2 + $0xe0] sm:$0xff]   ;;  %v1316_v24 = vld [vmem:[#allocation2 + $0x28] sm:$0xff]   ;;  %v1468_v5 = vmov 0.0  }
  0x3c   :  { %1173 = vmatprep.subr.bf16.mxu0 %v1303_v8  ;;  %v1310_v15 = vld [vmem:[#allocation2 + $0x98] sm:$0xff]   ;;  %v1314_v19 = vld [vmem:[#allocation2 + $0xa0] sm:$0xff]   ;;  %v1317_v25 = vld [vmem:[#allocation2 + $0xe8] sm:$0xff]  }
  0x3d   :  { %1194 = vmatpush3.bf16.msra.mxu1 %v1302_v7  ;;  %v1318_v26 = vld [vmem:[#allocation2 + $0xa8] sm:$0xff]   ;;  %v1319_v27 = vld [vmem:[#allocation2 + $0x70] sm:$0xff]   ;;  %v1323_v33 = vld [vmem:[#allocation2 + $0x78] sm:$0xff]  }
  0x3e   :  { %1195 = vmatprep.subr.bf16.mxu1 %v1305_v10  ;;  %v1320_v30 = vld [vmem:[#allocation2 + $0x30] sm:$0xff]   ;;  %v1324_v35 = vld [vmem:[#allocation2 + $0x38] sm:$0xff]   ;;  %v74_v37 = vld [vmem:[%s1647_s0] sm:$0xff] }
  0x3f   :  { %1174 = vmatpush3.bf16.msra.mxu0 %v1304_v9  ;;  %v1321_v31 = vld [vmem:[#allocation2 + $0xf0] sm:$0xff]   ;;  %v1325_v36 = vld [vmem:[#allocation2 + $0xf8] sm:$0xff]   ;;  %v85_v38 = vrot.slane %v74_v37, %v84_v34  ;;  %v78_v40 = vcombine.high %v74_v37, %v74_v37  ;;  %v1327_v41 = vld [vmem:[#allocation2 + $0x140] sm:$0xff]  }
  0x40   :  { %1175 = vmatprep.subr.bf16.mxu0 %v1307_v12  ;;  %v1322_v32 = vld [vmem:[#allocation2 + $0xb0] sm:$0xff]   ;;  %v1326_v39 = vld [vmem:[#allocation2 + $0xb8] sm:$0xff]   ;;  %v1329_v47 = vld [vmem:[#allocation2 + $0x100] sm:$0xff]  }
  0x41   :  { %1196 = vmatpush3.bf16.msra.mxu1 %v1306_v11  ;;  %v93_v42 = vcombine.high %v85_v38, %v85_v38  ;;  %v92_v43 = vrot.slane %v78_v40, %v84_v34  ;;  %v109_v44 = vpack.c.bf16 %v85_v38, %v85_v38  ;;  %v1330_v49 = vld [vmem:[#allocation2 + $0x148] sm:$0xff]   ;;  %v1332_v52 = vld [vmem:[#allocation2 + $0x150] sm:$0xff]   ;;  %v1334_v54 = vld [vmem:[#allocation2 + $0x158] sm:$0xff]  }
  0x42   :  { %1197 = vmatprep.subr.bf16.mxu1 %v1309_v14  ;;  %v1331_v51 = vld [vmem:[#allocation2 + $0x108] sm:$0xff]   ;;  %v1333_v53 = vld [vmem:[#allocation2 + $0x110] sm:$0xff]   ;;  %v1335_v55 = vld [vmem:[#allocation2 + $0x118] sm:$0xff]  }
  0x43   :  { %1176 = vmatpush3.bf16.msra.mxu0 %v1308_v13  ;;  %v110_v45 = vpack.c.bf16 %v93_v42, %v93_v42  ;;  %v94_v46 = vcombine.high %v92_v43, %v92_v43  ;;  %v111_v48 = vpack.c.bf16 %v92_v43, %v92_v43  ;;  %v1336_v56 = vld [vmem:[#allocation2 + $0x160] sm:$0xff]   ;;  %v1077_v57 = vld.sshfl [vmem:[%s1647_s0 + $0x8] sm:$0x33 pattern:$0x76325410]  ;;  %v1340_v63 = vld [vmem:[#allocation2 + $0x170] sm:$0xff]  }
  0x44   :  { %1177 = vmatprep.subr.bf16.mxu0 %v1311_v16  ;;  %v102_v58 = vcombine.high %v1077_v57, %v1077_v57  ;;  %v1337_v59 = vld [vmem:[#allocation2 + $0x120] sm:$0xff]   ;;  %v1338_v60 = vld [vmem:[#allocation2 + $0x168] sm:$0xff]   ;;  %v1341_v0 = vld [vmem:[#allocation2 + $0x130] sm:$0xff]   ;;  %v113_v3 = vpack.c.bf16 %v1077_v57, %v1077_v57 }
  0x45   :  { %1198 = vmatpush3.bf16.msra.mxu1 %v1310_v15  ;;  %538 = vmatprep.mubr.bf16.mxu0 %v110_v45  ;;  %v112_v50 = vpack.c.bf16 %v94_v46, %v94_v46  ;;  %v1339_v62 = vld [vmem:[#allocation2 + $0x128] sm:$0xff]   ;;  %v1342_v1 = vld [vmem:[#allocation2 + $0x178] sm:$0xff]   ;;  %v1344_v4 = vld [vmem:[#allocation4] sm:$0xff]  }
  0x46   :  { %1199 = vmatprep.subr.bf16.mxu1 %v1313_v18  ;;  %v114_v61 = vpack.c.bf16 %v102_v58, %v102_v58  ;;  %v1343_v2 = vld [vmem:[#allocation2 + $0x138] sm:$0xff]   ;;  %v1345_v6 = vld [vmem:[#allocation4 + $0x8] sm:$0xff]   ;;  %v1346_v7 = vld [vmem:[#allocation4 + $0x10] sm:$0xff]  }
  0x47   :  { %1178 = vmatpush3.bf16.msra.mxu0 %v1312_v17  ;;  %578 = vmatprep.mubr.bf16.mxu1 %v112_v50  ;;  %v1347_v8 = vld [vmem:[#allocation4 + $0x18] sm:$0xff]   ;;  %v1348_v9 = vld [vmem:[#allocation4 + $0x20] sm:$0xff]   ;;  %v1349_v10 = vld [vmem:[#allocation4 + $0x28] sm:$0xff]  }
  0x48   :  { %1179 = vmatprep.subr.bf16.mxu0 %v1315_v20  ;;  %v1350_v11 = vld [vmem:[#allocation4 + $0x30] sm:$0xff]   ;;  %v1351_v12 = vld [vmem:[#allocation4 + $0x38] sm:$0xff]   ;;  %v1352_v13 = vld [vmem:[%s1652_s5] ss:$8 sps:$4 sm:$0xff]  }
  0x49   :  { %1200 = vmatpush3.bf16.msra.mxu1 %v1314_v19  ;;  %v1354_v14 = vld [vmem:[%s1652_s5 + $0x4] ss:$8 sps:$4 sm:$0xff]   ;;  %v1357_v15 = vld [vmem:[%s1652_s5 + $0x14] ss:$8 sps:$4 sm:$0xff]   ;;  %v1355_v16 = vld [vmem:[%s1652_s5 + $0x10] ss:$8 sps:$4 sm:$0xff]  }
  0x4a   :  { %1201 = vmatprep.subr.bf16.mxu1 %v1317_v25  ;;  %v1360_v17 = vld [vmem:[%s1652_s5 + $0x24] ss:$8 sps:$4 sm:$0xff]   ;;  %v1358_v18 = vld [vmem:[%s1652_s5 + $0x20] ss:$8 sps:$4 sm:$0xff]   ;;  %v1363_v19 = vld [vmem:[%s1652_s5 + $0x34] ss:$8 sps:$4 sm:$0xff]  }
  0x4b   :  { %1180 = vmatpush3.bf16.msra.mxu0 %v1316_v24  ;;  %v1361_v20 = vld [vmem:[%s1652_s5 + $0x30] ss:$8 sps:$4 sm:$0xff]   ;;  %v1366_v21 = vld [vmem:[%s1652_s5 + $0x44] ss:$8 sps:$4 sm:$0xff]   ;;  %v1364_v22 = vld [vmem:[%s1652_s5 + $0x40] ss:$8 sps:$4 sm:$0xff]  }
  0x4c   :  { %1181 = vmatprep.subr.bf16.mxu0 %v1319_v27  ;;  %v1369_v23 = vld [vmem:[%s1652_s5 + $0x54] ss:$8 sps:$4 sm:$0xff]   ;;  %v1367_v24 = vld [vmem:[%s1652_s5 + $0x50] ss:$8 sps:$4 sm:$0xff]   ;;  %v1372_v25 = vld [vmem:[%s1652_s5 + $0x64] ss:$8 sps:$4 sm:$0xff]  }
  0x4d   :  { %1202 = vmatpush3.bf16.msra.mxu1 %v1318_v26  ;;  %v1370_v26 = vld [vmem:[%s1652_s5 + $0x60] ss:$8 sps:$4 sm:$0xff]   ;;  %v1373_v50 = vld [vmem:[%s1652_s5 + $0x70] ss:$8 sps:$4 sm:$0xff]  }
  0x4e   :  { %1203 = vmatprep.subr.bf16.mxu1 %v1321_v31  ;;  %v1078_v28 = vld [vmem:[%s1649_s2] ss:$0 sm:$0xff]  ;;  %v1381_v57 = vld [vmem:[#allocation6 + $0x10] sm:$0xff]   ;;  %v1382_v58 = vld [vmem:[#allocation6 + $0x58] sm:$0xff]  }
  0x4f   :  { %1182 = vmatpush3.bf16.msra.mxu0 %v1320_v30 }
  0x50   :  { %1183 = vmatprep.subr.bf16.mxu0 %v1323_v33 }
  0x51   :  { %1204 = vmatpush3.bf16.msra.mxu1 %v1322_v32 }
  0x52   :  { %1205 = vmatprep.subr.bf16.mxu1 %v1325_v36 }
  0x53   :  { %1184 = vmatpush3.bf16.msra.mxu0 %v1324_v35 }
  0x54   :  { %1213 = vmatprep.subr.bf16.mxu0 %v1327_v41 }
  0x55   :  { %1206 = vmatpush3.bf16.msra.mxu1 %v1326_v39 }
  0x56   :  { %539 = vmatmul.mubr.bf16.vlgmr.msra.gmra.mrb[0].mxu0 %v109_v44  ;;  %1266 = vmatprep.subr.bf16.mxu1 %v1468_v5 }
  0x57   :  { %1214 = vmatpush3.bf16.msra.mxu0 %v1329_v47  ;;  %618 = vmatprep.mubr.bf16.mxu0 %v114_v61  ;;  %v1385_v61 = vld [vmem:[#allocation6 + $0x20] sm:$0xff]  }
  0x58   :  { %579 = vmatmul.mubr.bf16.vlgmr.msra.gmra.mrb[0].mxu1 %v111_v48  ;;  %1215 = vmatprep.subr.bf16.mxu0 %v1330_v49  ;;  %v1375_v49 = vld [vmem:[%s1652_s5 + $0x74] ss:$8 sps:$4 sm:$0xff]  }
  0x59   :  { %1267 = vmatpush3.bf16.msra.mxu1 %v1344_v4  ;;  %1282 = vmatprep.mubr.msk.bf16.mxu1 %vm1469_vm0, %v1468_v5 }
  0x5a   :  { %1268 = vmatprep.subr.bf16.mxu1 %v1468_v5 }
  0x5b   :  { %1216 = vmatpush3.bf16.msra.mxu0 %v1331_v51  ;;  %v1470_v51 = vmov 0  }
  0x5c   :  { %1217 = vmatprep.subr.bf16.mxu0 %v1332_v52  ;;  %v1376_v52 = vld [vmem:[#allocation6 + $0x40] sm:$0xff]  }
  0x5d   :  { %1269 = vmatpush3.bf16.msra.mxu1 %v1345_v6 }
  0x5e   :  { %1270 = vmatprep.subr.bf16.mxu1 %v1468_v5 }
  0x5f   :  { %1218 = vmatpush3.bf16.msra.mxu0 %v1333_v53  ;;  %v1377_v53 = vld [vmem:[#allocation6] sm:$0xff]  }
  0x60   :  { %1219 = vmatprep.subr.bf16.mxu0 %v1334_v54  ;;  %v1378_v54 = vld [vmem:[#allocation6 + $0x48] sm:$0xff]  }
  0x61   :  { %1271 = vmatpush3.bf16.msra.mxu1 %v1346_v7 }
  0x62   :  { %1272 = vmatprep.subr.bf16.mxu1 %v1468_v5 }
  0x63   :  { %1220 = vmatpush3.bf16.msra.mxu0 %v1335_v55  ;;  %v1379_v55 = vld [vmem:[#allocation6 + $0x8] sm:$0xff]  }
  0x64   :  { %1221 = vmatprep.subr.bf16.mxu0 %v1336_v56  ;;  %v1380_v56 = vld [vmem:[#allocation6 + $0x50] sm:$0xff]  }
  0x65   :  { %1273 = vmatpush3.bf16.msra.mxu1 %v1347_v8  ;;  %v1388_v8 = vld [vmem:[#allocation6 + $0x70] sm:$0xff]  }
  0x66   :  { %1274 = vmatprep.subr.bf16.mxu1 %v1468_v5 }
  0x67   :  { %1222 = vmatpush3.bf16.msra.mxu0 %v1337_v59  ;;  %v1383_v59 = vld [vmem:[#allocation6 + $0x18] sm:$0xff]  }
  0x68   :  { %1223 = vmatprep.subr.bf16.mxu0 %v1338_v60  ;;  %v1384_v60 = vld [vmem:[#allocation6 + $0x60] sm:$0xff]  }
  0x69   :  { %1275 = vmatpush3.bf16.msra.mxu1 %v1348_v9  ;;  %v1389_v9 = vld [vmem:[#allocation6 + $0x30] sm:$0xff]  }
  0x6a   :  { %1276 = vmatprep.subr.bf16.mxu1 %v1468_v5 }
  0x6b   :  { %1224 = vmatpush3.bf16.msra.mxu0 %v1339_v62  ;;  %v1386_v62 = vld [vmem:[#allocation6 + $0x68] sm:$0xff]  }
  0x6c   :  { %1225 = vmatprep.subr.bf16.mxu0 %v1340_v63  ;;  %v1387_v63 = vld [vmem:[#allocation6 + $0x28] sm:$0xff]  }
  0x6d   :  { %1277 = vmatpush3.bf16.msra.mxu1 %v1349_v10  ;;  %v1390_v10 = vld [vmem:[#allocation6 + $0x78] sm:$0xff]  }
  0x6e   :  { %1278 = vmatprep.subr.bf16.mxu1 %v1468_v5 }
  0x6f   :  { %1226 = vmatpush3.bf16.msra.mxu0 %v1341_v0  ;;  %v1127_v0 = vld [vmem:[%s1651_s4] ss:$0 sm:$0xff] }
  0x70   :  { %1227 = vmatprep.subr.bf16.mxu0 %v1342_v1 }
  0x71   :  { %1279 = vmatpush3.bf16.msra.mxu1 %v1350_v11  ;;  %v1391_v11 = vld [vmem:[#allocation6 + $0x38] sm:$0xff]  }
  0x72   :  { %1280 = vmatprep.subr.bf16.mxu1 %v1468_v5 }
  0x73   :  { %1228 = vmatpush3.bf16.msra.mxu0 %v1343_v2 }
  0x74   :  { %849 = vmatprep.subr.bf16.mxu0 %v1354_v14  ;;  %v765_v14 = vsub.s32 1, %v1573_v29 }
  0x75   :  { %1281 = vmatpush3.bf16.msra.mxu1 %v1351_v12  ;;  %v761_v12 = vsub.s32 0, %v1573_v29 }
  0x76   :  { %619 = vmatmul.mubr.bf16.vlgmr.msra.gmra.mrb[4].mxu0 %v113_v3  ;;  %1244 = vmatprep.subr.bf16.mxu1 %v1376_v52 }
  0x77   :  { %850 = vmatpush1.bf16.msra.mxu0 %v1352_v13  ;;  %881 = vmatprep.mubr.bf16.mxu0 %v1470_v51  ;;  %v757_v13 = vld [vmem:[%s1653_s6] sm:$0x3] }
  0x78   :  { %851 = vmatprep.subr.bf16.mxu0 %v1357_v15  ;;  %v762_v15 = vrot.slane %v757_v13, %v761_v12 }
  0x7b   :  { %852 = vmatpush1.bf16.msra.mxu0 %v1355_v16  ;;  %v766_v16 = vrot.slane %v757_v13, %v765_v14 }
  0x7c   :  { %853 = vmatprep.subr.bf16.mxu0 %v1360_v17 }
  0x7f   :  { %854 = vmatpush1.bf16.msra.mxu0 %v1358_v18 }
  0x80   :  { %855 = vmatprep.subr.bf16.mxu0 %v1363_v19 }
  0x83   :  { %856 = vmatpush1.bf16.msra.mxu0 %v1361_v20 }
  0x84   :  { %857 = vmatprep.subr.bf16.mxu0 %v1366_v21 }
  0x87   :  { %858 = vmatpush1.bf16.msra.mxu0 %v1364_v22 }
  0x88   :  { %859 = vmatprep.subr.bf16.mxu0 %v1369_v23 }
  0x8b   :  { %860 = vmatpush1.bf16.msra.mxu0 %v1367_v24 }
  0x8c   :  { %861 = vmatprep.subr.bf16.mxu0 %v1372_v25 }
  0x8f   :  { %862 = vmatpush1.bf16.msra.mxu0 %v1370_v26 }
  0x90   :  { %863 = vmatprep.subr.bf16.mxu0 %v1375_v49 }
  0x93   :  { %864 = vmatpush1.bf16.msra.mxu0 %v1373_v50 }
 0x129   :  { %v1185_v27 = vpop.f32.mrb[0].mxu0 }
 0x12a   :  { %v1186_v30 = vpop.f32.mrb[1].mxu0 }
 0x12b   :  { %v1187_v31 = vadd.f32 %v1186_v30, %v1185_v27  ;;  %v1188_v32 = vpop.f32.mrb[2].mxu0  ;;  %v1207_v33 = vpop.f32.mrb[0].mxu1 }
 0x12c   :  { %v1189_v34 = vpop.f32.mrb[3].mxu0  ;;  %v1208_v35 = vpop.f32.mrb[1].mxu1 }
 0x12d   :  { %v541_v36 = vadd.f32 %v1187_v31, %v1078_v28  ;;  %v1209_v37 = vadd.f32 %v1208_v35, %v1207_v33  ;;  %v1210_v38 = vpop.f32.mrb[2].mxu1  ;;  %v1152_v28 = vld [vmem:[%s1655_s8] ss:$0 sm:$0xff] }
 0x12e   :  { %v1211_v39 = vpop.f32.mrb[3].mxu1 }
 0x12f   :  { %v581_v40 = vadd.f32 %v1209_v37, %v541_v36 }
 0x149   :  { %v1229_v41 = vpop.f32.mrb[4].mxu0 }
 0x14a   :  { %v1230_v42 = vpop.f32.mrb[5].mxu0 }
 0x14b   :  { %v1231_v43 = vadd.f32 %v1230_v42, %v1229_v41  ;;  %v1232_v44 = vpop.f32.mrb[6].mxu0 }
 0x14c   :  { %v1233_v45 = vpop.f32.mrb[7].mxu0 }
 0x14d   :  { %v621_v46 = vadd.f32 %v1231_v43, %v581_v40 }
 0x14f   :  { %v626_v47 = vmax.f32 %v621_v46, 0.0 }
 0x151   :  { %v627_v48 = vpack.c.bf16 %v626_v47, %v626_v47 }
 0x153   :  { %1283 = vmatmul.mubr.bf16.vlgmr.msra.gmra.mrb[4].mxu1 %v627_v48 }
 0x154   :  { %1245 = vmatpush3.bf16.msra.mxu1 %v1377_v53 }
 0x155   :  { %1246 = vmatprep.subr.bf16.mxu1 %v1378_v54 }
 0x158   :  { %1247 = vmatpush3.bf16.msra.mxu1 %v1379_v55 }
 0x159   :  { %1248 = vmatprep.subr.bf16.mxu1 %v1380_v56 }
 0x15c   :  { %1249 = vmatpush3.bf16.msra.mxu1 %v1381_v57 }
 0x15d   :  { %1250 = vmatprep.subr.bf16.mxu1 %v1382_v58 }
 0x160   :  { %1251 = vmatpush3.bf16.msra.mxu1 %v1383_v59 }
 0x161   :  { %1252 = vmatprep.subr.bf16.mxu1 %v1384_v60 }
 0x164   :  { %1253 = vmatpush3.bf16.msra.mxu1 %v1385_v61 }
 0x165   :  { %1254 = vmatprep.subr.bf16.mxu1 %v1386_v62 }
 0x168   :  { %1255 = vmatpush3.bf16.msra.mxu1 %v1387_v63 }
 0x169   :  { %1256 = vmatprep.subr.bf16.mxu1 %v1388_v8 }
 0x16c   :  { %1257 = vmatpush3.bf16.msra.mxu1 %v1389_v9 }
 0x16d   :  { %1258 = vmatprep.subr.bf16.mxu1 %v1390_v10 }
 0x170   :  { %1259 = vmatpush3.bf16.msra.mxu1 %v1391_v11 }
 0x226   :  { %v733_v1 = vpop.f32.mrb[4].mxu1 }
 0x227   :  { %v734_v2 = vadd.f32 %v1127_v0, %v733_v1  ;;  %v1284_v3 = vpop.f32.mrb[5].mxu1 }
 0x228   :  { %v736_v4 = vpop.f32.mrb[6].mxu1 }
 0x229   :  { %v739_v5 = vmax.f32 %v734_v2, 0.0  ;;  %v1285_v6 = vpop.f32.mrb[7].mxu1 }
 0x22b   :  { %v740_v7 = vpack.c.bf16 %v739_v5, %v739_v5 }
 0x22d   :  { %882 = vmatmul.mubr.bf16.vlgmr.msra.gmra.mrb[8].mxu0 %v740_v7 }
 0x300   :  { %v883_v17 = vpop.f32.mrb[8].mxu0 }
 0x301   :  { %v884_v18 = vadd.f32 %v883_v17, %v762_v15  ;;  %v885_v19 = vpop.f32.mrb[9].mxu0 }
 0x302   :  { %v886_v20 = vadd.f32 %v885_v19, %v766_v16  ;;  %v887_v21 = vpop.f32.mrb[10].mxu0 }
 0x303   :  { %v890_v22 = vmax.f32 %v884_v18, 0.0  ;;  %v888_v23 = vpop.f32.mrb[11].mxu0 }
 0x304   :  { %v891_v24 = vmax.f32 %v886_v20, 0.0 }
 0x305   :  { %v892_v26 = vpack.c.bf16 %v890_v22, %v890_v22 }
 0x306   :  { %v893_v25 = vpack.c.bf16 %v891_v24, %v891_v24 }
 0x308   :  { %1061 = vmatprep.mubr.bf16.mxu1 %v893_v25 }
 0x309   :  { %1062 = vmatmul.mubr.bf16.vlgmr.msra.gmra.mrb[8].mxu1 %v892_v26 }
 0x3dc   :  { %v1260_v27 = vpop.f32.mrb[8].mxu1 }
 0x3dd   :  { %v1261_v29 = vpop.f32.mrb[9].mxu1 }
 0x3de   :  { %v1262_v30 = vadd.f32 %v1261_v29, %v1260_v27  ;;  %v1263_v31 = vpop.f32.mrb[10].mxu1 }
 0x3df   :  { %v1264_v32 = vpop.f32.mrb[11].mxu1 }
 0x3e0   :  { %v1064_v33 = vadd.f32 %v1262_v30, %v1152_v28 }
 0x3e2   :  { %v1069_v34 = vpack.c.bf16 %v1064_v33, %v1064_v33 }
 0x3e4   :  { %1070 = vst [vmem:[%s1656_s9] sm:$0x1] %v1069_v34 }
 0x3e5   :  { %1075 = vsyncpa [#allocation3], 1 }
 0x3e6   :  { %1076 = vsyncpa [#allocation5], 1 }

</bundles_post_ra>
